<compile_context>
chip_gen: v5e
topology: v5e:2x2
jax: 0.10.0
libtpu: 0.0.40
codegen_flags: <defaults>
</compile_context>

<pallas_src>
from functools import partial

import jax
import jax.numpy as jnp
import numpy as np
from jax.experimental import pallas as pl
from jax.experimental.pallas import tpu as pltpu

LAYERS = [2, 50, 50, 50, 1]
FPAD = 64     # sublane-padded hidden width (50 -> 64)
DIN = 2       # true input-feature count (x, t)
TN_MAX = 2048 # cap on the batch (lane) tile


def pinn_kernel(x_ref, w1_ref, w23_ref, w4_ref, b_ref, o_ref):
    """Fused 4-layer MLP in feature-major layout for one batch tile.

    x_ref  : (2, TN)       input features (rows = (x, t)), f32
    w1_ref : (64, 2)       layer-1 weight, (out, in), zero-padded, f32
    w23_ref: (2, 64, 64)   layers 2 & 3 weights, (out, in), zero-padded (f32 or bf16)
    w4_ref : (1, 64)       layer-4 weight, (out, in), zero-padded (f32 or bf16)
    b_ref  : (64, 4)       biases as columns (b1, b2, b3, b4-in-row-0), f32
    o_ref  : (1, 1, TN)    lane-dense output row for this batch tile, f32
    """
    cdt = w23_ref.dtype  # hidden compute dtype (f32, or bf16 on v6e/v7x)

    # Layer 1: only 2 real input features -> two VPU broadcast-FMAs (no MXU pass,
    # no zero-padded contraction rows).
    xt = x_ref[...]                              # (2, TN)  f32
    w1 = w1_ref[...]                             # (64, 2)  f32
    pre1 = (w1[:, 0:1] * xt[0:1, :]
            + w1[:, 1:2] * xt[1:2, :]
            + b_ref[:, 0:1])                     # (64, TN) f32
    h = jnp.tanh(pre1.astype(cdt))

    # Layers 2 & 3: (64,64) @ (64,TN) on the MXU, f32 accumulation, tanh in cdt.
    h = jnp.tanh((jnp.dot(w23_ref[0], h, preferred_element_type=jnp.float32)
                  + b_ref[:, 1:2]).astype(cdt))
    h = jnp.tanh((jnp.dot(w23_ref[1], h, preferred_element_type=jnp.float32)
                  + b_ref[:, 2:3]).astype(cdt))

    # Output layer: (1,64) @ (64,TN) -> (1,TN), lane-dense store, no tanh.
    out = (jnp.dot(w4_ref[...], h, preferred_element_type=jnp.float32)
           + b_ref[0:1, 3:4])                    # (1, TN) f32
    o_ref[...] = out.reshape(o_ref.shape).astype(o_ref.dtype)


def init_params(key, layers):
    """Deterministic PyTorch-style nn.Linear init: U(-1/sqrt(fan_in), +1/sqrt(fan_in)).
    Weights stored as (in, out) (math: y = x @ w + b)."""
    params = []
    for i in range(len(layers) - 1):
        key, kw, kb = jax.random.split(key, 3)
        fan_in, fan_out = layers[i], layers[i + 1]
        bound = 1.0 / np.sqrt(fan_in)
        w = jax.random.uniform(kw, (fan_in, fan_out), jnp.float32, -bound, bound)
        b = jax.random.uniform(kb, (fan_out,), jnp.float32, -bound, bound)
        params.append((w, b))
    return params


def pack_params(params, hidden_dtype=jnp.float32):
    """Pad / transpose the weights once (hoisted out of the per-call hot path).

    hidden_dtype=jnp.bfloat16 enables the bf16 hidden path (recommended on
    v6e/v7x); keep jnp.float32 on v5e.
    """
    (w1, b1), (w2, b2), (w3, b3), (w4, b4) = params

    # Weights in (out, in) layout, zero-padded to the 64-wide hidden dim.
    w1_p = jnp.zeros((FPAD, DIN), jnp.float32).at[:w1.shape[1], :].set(w1.T)

    w23_p = jnp.zeros((2, FPAD, FPAD), hidden_dtype)
    w23_p = w23_p.at[0, :w2.shape[1], :w2.shape[0]].set(w2.T.astype(hidden_dtype))
    w23_p = w23_p.at[1, :w3.shape[1], :w3.shape[0]].set(w3.T.astype(hidden_dtype))

    w4_p = jnp.zeros((1, FPAD), hidden_dtype)
    w4_p = w4_p.at[0, :w4.shape[0]].set(w4[:, 0].astype(hidden_dtype))

    # Biases fused as columns of a single (64, 4) matrix (always f32).
    b_all = jnp.zeros((FPAD, 4), jnp.float32)
    b_all = b_all.at[:b1.shape[0], 0].set(b1)
    b_all = b_all.at[:b2.shape[0], 1].set(b2)
    b_all = b_all.at[:b3.shape[0], 2].set(b3)
    b_all = b_all.at[0, 3].set(b4[0])

    return (w1_p, w23_p, w4_p, b_all)


def _pick_tn(n):
    """Batch tile: big enough to amortize per-step overhead, >=2 tiles when
    possible so both v7x TensorCores get work; always a multiple of 128."""
    target = -(-n // 2)                      # ceil(n / 2)
    target = ((target + 127) // 128) * 128   # round up to a lane multiple
    return int(max(128, min(TN_MAX, target)))


@partial(jax.jit, static_argnums=(2,))
def _pinn_forward_impl(x, packed, tn):
    w1_p, w23_p, w4_p, b_all = packed
    N, din = x.shape
    n_tiles = pl.cdiv(N, tn)
    n_pad = n_tiles * tn

    # Feature-major input: (2, n_pad); columns >= N are zero (sliced away below).
    x_t = jnp.zeros((DIN, n_pad), jnp.float32).at[:din, :N].set(x.T)

    out = pl.pallas_call(
        pinn_kernel,
        out_shape=jax.ShapeDtypeStruct((n_tiles, 1, tn), jnp.float32),
        grid_spec=pltpu.PrefetchScalarGridSpec(
            num_scalar_prefetch=0,
            grid=(n_tiles,),
            in_specs=[
                pl.BlockSpec((DIN, tn), lambda i: (0, i)),           # x tile
                pl.BlockSpec((FPAD, DIN), lambda i: (0, 0)),         # W1 (resident)
                pl.BlockSpec((2, FPAD, FPAD), lambda i: (0, 0, 0)),  # W2, W3 (resident)
                pl.BlockSpec((1, FPAD), lambda i: (0, 0)),           # W4 (resident)
                pl.BlockSpec((FPAD, 4), lambda i: (0, 0)),           # biases (resident)
            ],
            out_specs=pl.BlockSpec((1, 1, tn), lambda i: (i, 0, 0)),
        ),
        compiler_params=pltpu.CompilerParams(
            dimension_semantics=("parallel",)),  # v7x: shard batch tiles over both TCs
    )(x_t, w1_p, w23_p, w4_p, b_all)

    # (n_tiles, 1, TN) -> flat batch order -> (N, 1)
    return out.reshape(n_pad, 1)[:N]


def pinn_forward(x, packed):
    """x: (N, 2) float32, packed = pack_params(params, ...) -> (N, 1) float32."""
    return _pinn_forward_impl(x, packed, _pick_tn(x.shape[0]))


def pinn_reference(x, params):
    """Pure-JAX reference matching the PyTorch nn.Sequential forward."""
    h = x
    for i, (w, b) in enumerate(params):
        h = h @ w + b
        if i < len(params) - 1:
            h = jnp.tanh(h)
    return h


if __name__ == "__main__":
    key = jax.random.PRNGKey(0)
    key, kparams, kx = jax.random.split(key, 3)

    params = init_params(kparams, LAYERS)
    packed_f32 = pack_params(params, jnp.float32)   # pack once, reuse across calls

    # Input: (N, 2) = (x, t) collocation points, as the PINN forward implies.
    N = 256
    x = jax.random.uniform(kx, (N, 2), jnp.float32, -1.0, 1.0)

    out = jax.block_until_ready(pinn_forward(x, packed_f32))
    ref = pinn_reference(x, params)
    np.testing.assert_allclose(np.asarray(out), np.asarray(ref),
                               rtol=1e-5, atol=1e-5)
    assert out.shape == (N, 1) and out.dtype == jnp.float32

    # Second check with a larger batch (multiple tiles, bigger TN).
    key, kx2 = jax.random.split(key)
    N2 = 4096
    x2 = jax.random.uniform(kx2, (N2, 2), jnp.float32, -1.0, 1.0)
    out2 = jax.block_until_ready(pinn_forward(x2, packed_f32))
    ref2 = pinn_reference(x2, params)
    np.testing.assert_allclose(np.asarray(out2), np.asarray(ref2),
                               rtol=1e-5, atol=1e-5)
    assert out2.shape == (N2, 1)

    # Optional bf16 hidden path (v6e/v7x optimization) — looser tolerance expected.
    packed_bf16 = pack_params(params, jnp.bfloat16)
    out_bf = jax.block_until_ready(pinn_forward(x, packed_bf16))
    np.testing.assert_allclose(np.asarray(out_bf), np.asarray(ref),
                               rtol=5e-2, atol=5e-2)

    print("KERNEL_OK")
</pallas_src>

<mosaic_0001>
module attributes {stable_mosaic.version = 11 : i64} {
  func.func @pinn_kernel(%arg0: i32, %arg1: memref<2x128xf32, #tpu.memory_space<vmem>>, %arg2: memref<64x2xf32, #tpu.memory_space<vmem>>, %arg3: memref<2x64x64xf32, #tpu.memory_space<vmem>>, %arg4: memref<1x64xf32, #tpu.memory_space<vmem>>, %arg5: memref<64x4xf32, #tpu.memory_space<vmem>>, %arg6: memref<1x1x128xf32, #tpu.memory_space<vmem>>) attributes {dimension_semantics = [#tpu.dimension_semantics<parallel>], iteration_bounds = array<i64: 2>, scalar_prefetch = 0 : i64, scratch_operands = 0 : i64, tpu.core_type = #tpu.core_type<tc>, window_params = [{transform_indices = @transform_0, window_bounds = array<i64: 2, 128>}, {pipeline_mode = #tpu.pipeline_mode<synchronous>, transform_indices = @transform_1, window_bounds = array<i64: 64, 2>}, {pipeline_mode = #tpu.pipeline_mode<synchronous>, transform_indices = @transform_2, window_bounds = array<i64: 2, 64, 64>}, {pipeline_mode = #tpu.pipeline_mode<synchronous>, transform_indices = @transform_3, window_bounds = array<i64: 1, 64>}, {pipeline_mode = #tpu.pipeline_mode<synchronous>, transform_indices = @transform_4, window_bounds = array<i64: 64, 4>}, {transform_indices = @transform_5, window_bounds = array<i64: 1, 1, 128>}]} {
    %c0 = arith.constant 0 : index
    %c0_0 = arith.constant 0 : index
    %0 = vector.load %arg1[%c0, %c0_0] : memref<2x128xf32, #tpu.memory_space<vmem>>, vector<2x128xf32>
    %c0_1 = arith.constant 0 : index
    %c0_2 = arith.constant 0 : index
    %1 = vector.load %arg2[%c0_1, %c0_2] : memref<64x2xf32, #tpu.memory_space<vmem>>, vector<64x2xf32>
    %2 = vector.extract_strided_slice %1 {offsets = [0, 0], sizes = [64, 1], strides = [1, 1]} : vector<64x2xf32> to vector<64x1xf32>
    %3 = vector.extract_strided_slice %0 {offsets = [0, 0], sizes = [1, 128], strides = [1, 1]} : vector<2x128xf32> to vector<1x128xf32>
    %4 = vector.broadcast %2 : vector<64x1xf32> to vector<64x128xf32>
    %5 = vector.broadcast %3 : vector<1x128xf32> to vector<64x128xf32>
    %6 = arith.mulf %4, %5 : vector<64x128xf32>
    %7 = vector.extract_strided_slice %1 {offsets = [0, 1], sizes = [64, 1], strides = [1, 1]} : vector<64x2xf32> to vector<64x1xf32>
    %8 = vector.extract_strided_slice %0 {offsets = [1, 0], sizes = [1, 128], strides = [1, 1]} : vector<2x128xf32> to vector<1x128xf32>
    %9 = vector.broadcast %7 : vector<64x1xf32> to vector<64x128xf32>
    %10 = vector.broadcast %8 : vector<1x128xf32> to vector<64x128xf32>
    %11 = arith.mulf %9, %10 : vector<64x128xf32>
    %12 = arith.addf %6, %11 : vector<64x128xf32>
    %c0_3 = arith.constant 0 : index
    %c0_4 = arith.constant 0 : index
    %13 = vector.load %arg5[%c0_3, %c0_4] : memref<64x4xf32, #tpu.memory_space<vmem>>, vector<64x1xf32>
    %14 = vector.broadcast %13 : vector<64x1xf32> to vector<64x128xf32>
    %15 = arith.addf %12, %14 : vector<64x128xf32>
    %16 = math.tanh %15 : vector<64x128xf32>
    %c0_5 = arith.constant 0 : index
    %c0_6 = arith.constant 0 : index
    %c0_7 = arith.constant 0 : index
    %17 = vector.load %arg3[%c0_5, %c0_6, %c0_7] : memref<2x64x64xf32, #tpu.memory_space<vmem>>, vector<1x64x64xf32>
    %18 = vector.shape_cast %17 : vector<1x64x64xf32> to vector<64x64xf32>
    %cst = arith.constant dense<0.000000e+00> : vector<64x128xf32>
    %19 = tpu.matmul %18, %16, %cst {dimension_numbers = #tpu.dot_dimension_numbers<[1], [0], [0], [1], [0, 0, 1, 1], [], []>} : vector<64x64xf32>, vector<64x128xf32>, vector<64x128xf32> -> vector<64x128xf32>
    %c0_8 = arith.constant 0 : index
    %c1 = arith.constant 1 : index
    %20 = vector.load %arg5[%c0_8, %c1] : memref<64x4xf32, #tpu.memory_space<vmem>>, vector<64x1xf32>
    %21 = vector.broadcast %20 : vector<64x1xf32> to vector<64x128xf32>
    %22 = arith.addf %19, %21 : vector<64x128xf32>
    %23 = math.tanh %22 : vector<64x128xf32>
    %c1_9 = arith.constant 1 : index
    %c0_10 = arith.constant 0 : index
    %c0_11 = arith.constant 0 : index
    %24 = vector.load %arg3[%c1_9, %c0_10, %c0_11] : memref<2x64x64xf32, #tpu.memory_space<vmem>>, vector<1x64x64xf32>
    %25 = vector.shape_cast %24 : vector<1x64x64xf32> to vector<64x64xf32>
    %cst_12 = arith.constant dense<0.000000e+00> : vector<64x128xf32>
    %26 = tpu.matmul %25, %23, %cst_12 {dimension_numbers = #tpu.dot_dimension_numbers<[1], [0], [0], [1], [0, 0, 1, 1], [], []>} : vector<64x64xf32>, vector<64x128xf32>, vector<64x128xf32> -> vector<64x128xf32>
    %c0_13 = arith.constant 0 : index
    %c2 = arith.constant 2 : index
    %27 = vector.load %arg5[%c0_13, %c2] : memref<64x4xf32, #tpu.memory_space<vmem>>, vector<64x1xf32>
    %28 = vector.broadcast %27 : vector<64x1xf32> to vector<64x128xf32>
    %29 = arith.addf %26, %28 : vector<64x128xf32>
    %30 = math.tanh %29 : vector<64x128xf32>
    %c0_14 = arith.constant 0 : index
    %c0_15 = arith.constant 0 : index
    %31 = vector.load %arg4[%c0_14, %c0_15] : memref<1x64xf32, #tpu.memory_space<vmem>>, vector<1x64xf32>
    %cst_16 = arith.constant dense<0.000000e+00> : vector<1x128xf32>
    %32 = tpu.matmul %31, %30, %cst_16 {dimension_numbers = #tpu.dot_dimension_numbers<[1], [0], [0], [1], [0, 0, 1, 1], [], []>} : vector<1x64xf32>, vector<64x128xf32>, vector<1x128xf32> -> vector<1x128xf32>
    %c0_17 = arith.constant 0 : index
    %c3 = arith.constant 3 : index
    %33 = vector.load %arg5[%c0_17, %c3] : memref<64x4xf32, #tpu.memory_space<vmem>>, vector<1x1xf32>
    %34 = vector.broadcast %33 : vector<1x1xf32> to vector<1x128xf32>
    %35 = arith.addf %32, %34 : vector<1x128xf32>
    %36 = vector.shape_cast %35 : vector<1x128xf32> to vector<1x1x128xf32>
    %c0_18 = arith.constant 0 : index
    %c0_19 = arith.constant 0 : index
    %c0_20 = arith.constant 0 : index
    %37 = vector.load %arg6[%c0_18, %c0_19, %c0_20] : memref<1x1x128xf32, #tpu.memory_space<vmem>>, vector<1x1x128xf32>
    tpu.vector_store %arg6[%c0_18, %c0_19, %c0_20], %36 {strides = array<i32>} : memref<1x1x128xf32, #tpu.memory_space<vmem>>, vector<1x1x128xf32>,
    return
  }
  func.func @transform_0(%arg0: i32) -> (i32, i32) {
    %c0_i32 = arith.constant 0 : i32
    %c0_i32_0 = arith.constant 0 : i32
    return %c0_i32, %arg0 : i32, i32
  }
  func.func @transform_1(%arg0: i32) -> (i32, i32) {
    %c0_i32 = arith.constant 0 : i32
    %c0_i32_0 = arith.constant 0 : i32
    %c0_i32_1 = arith.constant 0 : i32
    return %c0_i32, %c0_i32_0 : i32, i32
  }
  func.func @transform_2(%arg0: i32) -> (i32, i32, i32) {
    %c0_i32 = arith.constant 0 : i32
    %c0_i32_0 = arith.constant 0 : i32
    %c0_i32_1 = arith.constant 0 : i32
    %c0_i32_2 = arith.constant 0 : i32
    return %c0_i32, %c0_i32_0, %c0_i32_1 : i32, i32, i32
  }
  func.func @transform_3(%arg0: i32) -> (i32, i32) {
    %c0_i32 = arith.constant 0 : i32
    %c0_i32_0 = arith.constant 0 : i32
    %c0_i32_1 = arith.constant 0 : i32
    return %c0_i32, %c0_i32_0 : i32, i32
  }
  func.func @transform_4(%arg0: i32) -> (i32, i32) {
    %c0_i32 = arith.constant 0 : i32
    %c0_i32_0 = arith.constant 0 : i32
    %c0_i32_1 = arith.constant 0 : i32
    return %c0_i32, %c0_i32_0 : i32, i32
  }
  func.func @transform_5(%arg0: i32) -> (i32, i32, i32) {
    %c0_i32 = arith.constant 0 : i32
    %c0_i32_0 = arith.constant 0 : i32
    %c0_i32_1 = arith.constant 0 : i32
    return %arg0, %c0_i32, %c0_i32_0 : i32, i32, i32
  }
}

</mosaic_0001>

<bundles_post_ra>
// kernel: _pinn_forward_impl.1
= control target key start
LH: loop header
LB: loop body
LE: loop exit
PB: predicated region body
PF: predicated region fallthrough
CT: control target
= control target key end

     0   :  { %10 = vsyncpa [#allocation3], 0  ;;  %s1337_s0 = inlined_call_operand.hbm [shape: f32[2,256], index: 0, kind: input, shape index: {}]   ;;  %s1338_s1 = inlined_call_operand.vmem [shape: f32[64,2], index: 1, kind: input, shape index: {}]   ;;  %s1339_s2 = inlined_call_operand.vmem [shape: f32[2,64,64], index: 2, kind: input, shape index: {}]   ;;  %s1340_s3 = inlined_call_operand.vmem [shape: f32[1,64], index: 3, kind: input, shape index: {}]   ;;  %s1341_s4 = inlined_call_operand.vmem [shape: f32[64,4], index: 4, kind: input, shape index: {}]   ;;  %s1342_s5 = inlined_call_operand.hbm [shape: f32[2,1,128], index: 5, kind: output, shape index: {}]  }
   0x1   :  { %12 = vsyncpa [#allocation3 + $0x1], 0 }
   0x2   :  { %13 = vsyncpa [#allocation4], 0 }
   0x3   :  { %15 = vsyncpa [#allocation4 + $0x1], 0  ;;  %s1047_s18 = smov 0   ;;  %s1049_s19 = smov 0  }
   0x4   :  { %s1051_s20 = smov 0   ;;  %s1053_s21 = smov 0  }
   0x5 LB: > { %s1068_s22 = sadd.s32 4294967295, %s1011_s21   ;;  %s750_s23 = sadd.s32 4294967294, %s1011_s21   ;;  %s1011_s21 = sphi %s1053_s21, %s1352_s21   ;;  %s1007_s20 = sphi %s1051_s20, %s1351_s20   ;;  %s1003_s19 = sphi %s1049_s19, %s1350_s19   ;;  %s999_s18 = sphi %s1047_s18, %s1349_s18  }
   0x6   : > { %s1072_s24 = sadd.s32 1, %s1011_s21   ;;  %s28_s25 = sadd.s32 1, %s1007_s20 }
   0x7   : > { %s25_s26 = ssub.s32 %s1011_s21, %s1072_s24  ;;  %p35_p0 = scmp.ne.s32.totalorder %s1007_s20, %s1003_s19 }
   0x8   : > { %p26_p1 = scmp.eq.s32.totalorder %s25_s26, 0  ;;  %p36_p2 = scmp.eq.s32.totalorder %s1011_s21, 0 }
   0x9   : > { %p41_p3 = scmp.ne.s32.totalorder %s1003_s19, %s999_s18  ;;  %p42_p4 = scmp.eq.s32.totalorder %s1068_s22, 0 }
   0xa   : > { %s1084_s27 = scalar_select %p26_p1, %s1007_s20, %s28_s25  }
   0xb   : > { %p1086_p5 = por %p36_p2, %p35_p0  ;;  %p1090_p6 = por %p42_p4, %p41_p3 }
   0xc   : > { %p149_p7 = scmp.eq.s32.totalorder %s1068_s22, 1  ;;  %p155_p8 = scmp.eq.s32.totalorder %s750_s23, 1 }
   0xd   : > { %p812_p10 = scmp.lt.s32.totalorder %s1011_s21, 2  ;;  %s187_s7 = sand.u32 1, %s1007_s20  }
   0xe   : > { %p1097_p11 = por %p149_p7, %p35_p0  ;;  %p1101_p12 = por %p155_p8, %p41_p3 }
   0xf   : > { %s754_s8 = sshll.u32 %s1011_s21, 1  ;;  %s753_s9 = sshll.u32 %s187_s7, 1 }
  0x10   : > { %s195_s12 = scalar_lea.hbm %s1337_s0, %s754_s8  ;;  %s191_s14 = scalar_lea.vmem [#allocation2], %s753_s9 }
  0x11   : > { %s197_s13 = sshll.u32 %s195_s12, 4  ;;  %s199_s15 = sshll.u32 %s191_s14, 4  ;;  %s198_s13 = int_to_ptr.hbm [resolvable:$true] %s197_s13  ;;  %s200_s15 = int_to_ptr.vmem [resolvable:$true] %s199_s15 }
  0x12   : > { %p1112_p13 = pnand %p812_p10, %p1086_p5  ;;  %p755_p0 = scmp.ge.s32.totalorder %s1011_s21, 1 }
  0x13   : > { %p204_p1 = scmp.lt.s32.totalorder %s1011_s21, 3  ;;  %s188_s17 = scalar_lea.sflag [#allocation3], %s187_s7 }
  0x14   : > { %s915_s23 = sshra.s32 %s198_s13, 4  ;;  %p919_p3 = pneg %p1112_p13  ;;  %s916_s23 = int_to_ptr.hbm [resolvable:$true] %s915_s23 }
  0x15   : > { %s917_s25 = scalar_lea.hbm %s916_s23, 2  ;;  %s922_s28 = scalar_lea.hbm %s1337_s0, 4 }
  0x16   : > { %p918_p2 = scmp.ne.s32.totalorder %s916_s23, %s917_s25  ;;  %p923_p5 = scmp.lt.s32.totalorder %s916_s23, %s1337_s0 }
  0x17   : > { %p924_p8 = scmp.lt.s32.totalorder %s922_s28, %s917_s25 }
  0x18   : > { %p920_p4 = pnand %p919_p3, %p918_p2 }
  0x19   : > { %p925_p10 = por %p924_p8, %p923_p5 }
  0x1a   : > { %p921_p7 = pneg %p920_p4 }
  0x1c   : > { %p926_p9 = pnand %p925_p10, %p921_p7 }
  0x1e   : > { %929 = shalt.err (!%p926_p9)
}
  0x1f   : > { %807 = dma.hbm_to_vmem [thread:$0]  (!%p1112_p13), %s198_s13, 32, %s200_s15, %s188_s17  }
  0x20   : > { %p205_p2 = pnand %p755_p0, %p204_p1 }
  0x21   : > { %s1133_s7 = sand.u32 (!%p205_p2), 1, %s1003_s19  }
  0x22   : > { %208 = sbr.rel (%p205_p2) target bundleno = 719 (0x2cf), region = 40  ;;  %s756_s11 = sshll.u32 (!%p205_p2), %s1133_s7, 1 }
  0x23   : > { %s211_s12 = scalar_lea.sflag (!%p205_p2), [#allocation3], %s1133_s7  ;;  %s1137_s14 = scalar_lea.vmem (!%p205_p2), [#allocation2], %s756_s11 }
  0x27   : > { %990 = dma.done.wait (%p1090_p6), %s211_s12, 32  }
  0x28   : > { %992 = vsyncadd (%p1090_p6), %s211_s12, 4294967264  ;;  %v1013_v0 = vmov 0   ;;  %v249_v1 = vld [vmem:[%s1338_s1 + $0x38] sm:$0xff]  ;;  %v248_v2 = vld [vmem:[%s1338_s1 + $0x30] sm:$0xff]  ;;  %v1014_v4 = vmov 1   ;;  %vm452_vm0 = vcmask 523264   ;;  %s680_s10 = scalar_lea.hbm %s1342_s5, %s1068_s22 }
  0x29   : > { %854 = vset.pattern.permute.xlu2 %v1013_v0  ;;  %852 = vset.pattern.permute.xlu1 %v1013_v0  ;;  %v247_v3 = vld [vmem:[%s1338_s1 + $0x28] sm:$0xff]  ;;  %v246_v5 = vld [vmem:[%s1338_s1 + $0x20] sm:$0xff]  ;;  %v1158_v6 = vld [vmem:[%s1341_s4 + $0x38] sm:$0xff]  ;;  %s240_s11 = scalar_lea.vmem [#allocation5], %s1133_s7  ;;  %s684_s13 = sshll.u32 %s680_s10, 4  ;;  %s685_s13 = int_to_ptr.hbm [resolvable:$true] %s684_s13 }
  0x2a   : > { %850 = vset.pattern.permute.xlu0 %v1013_v0  ;;  %282 = vperm.xlu1 %852, %v248_v2   ;;  %v245_v7 = vld [vmem:[%s1338_s1 + $0x18] sm:$0xff]  ;;  %v1167_v8 = vld [vmem:[%s1341_s4 + $0x30] sm:$0xff]  ;;  %v1176_v10 = vld [vmem:[%s1341_s4 + $0x28] sm:$0xff]  ;;  %s682_s12 = sshll.u32 %s240_s11, 4  ;;  %s672_s15 = scalar_lea.sflag [#allocation4], %s1133_s7  ;;  %s683_s12 = int_to_ptr.vmem [resolvable:$true] %s682_s12 }
  0x2b   : > { %287 = vperm.xlu0 %850, %v249_v1   ;;  %277 = vperm.xlu2 %854, %v247_v3   ;;  %v244_v9 = vld [vmem:[%s1338_s1 + $0x10] sm:$0xff]  ;;  %v243_v11 = vld [vmem:[%s1338_s1 + $0x8] sm:$0xff]  ;;  %v1185_v12 = vld [vmem:[%s1341_s4 + $0x20] sm:$0xff]  ;;  %s959_s16 = sshra.s32 %s685_s13, 4  ;;  %s965_s22 = scalar_lea.hbm %s1342_s5, 2  ;;  %s960_s16 = int_to_ptr.hbm [resolvable:$true] %s959_s16 }
  0x2c   : > { %v242_v13 = vld [vmem:[%s1338_s1] sm:$0xff]  ;;  %v1194_v14 = vld [vmem:[%s1341_s4 + $0x18] sm:$0xff]  ;;  %v1205_v16 = vld [vmem:[%s1341_s4 + $0x10] sm:$0xff]  ;;  %s961_s17 = scalar_lea.hbm %s960_s16, 1  ;;  %p966_p0 = scmp.lt.s32.totalorder %s960_s16, %s1342_s5 }
  0x2d   : > { %v1200_v15 = vld [vmem:[%s1341_s4] sm:$0xff]  ;;  %v1210_v17 = vld [vmem:[%s1341_s4 + $0x8] sm:$0xff]  ;;  %p962_p6 = scmp.ne.s32.totalorder %s960_s16, %s961_s17  ;;  %p967_p1 = scmp.lt.s32.totalorder %s965_s22, %s961_s17 }
  0x2e   : > { %v241_v25 = vld [vmem:[%s1137_s14] sm:$0x3] }
  0x2f   : > { %v331_v26 = vperm.slane %v241_v25, 1  ;;  %v290_v27 = vperm.slane %v241_v25, 0  ;;  %p963_p9 = pnand %p962_p6, %p1097_p11  ;;  %p968_p3 = por %p967_p1, %p966_p0 }
  0x31   : > { %p964_p13 = pneg %p963_p9 }
  0x32   : > { %853 = vset.pattern.permute.xlu1 %v1014_v4 }
  0x33   : > { %851 = vset.pattern.permute.xlu0 %v1014_v4  ;;  %855 = vset.pattern.permute.xlu2 %v1014_v4  ;;  %p969_p4 = pnand %p968_p3, %p964_p13 }
  0x34   : > { %328 = vperm.xlu0 %851, %v249_v1   ;;  %324 = vperm.xlu1 %853, %v248_v2  }
  0x35   : > { %320 = vperm.xlu2 %855, %v247_v3  }
  0x3c   : > { %316 = vperm.xlu0 %851, %v246_v5   ;;  %856 = vset.pattern.permute.xlu1 %v1013_v0 }
  0x3d   : > { %857 = vset.pattern.permute.xlu2 %v1013_v0  ;;  %393 = vperm.xlu1 %856, %v1158_v6  }
  0x3e   : > { %272 = vperm.xlu2 %857, %v246_v5  }
  0x44   : > { %312 = vperm.xlu0 %851, %v245_v7  }
  0x45   : > { %388 = vperm.xlu1 %856, %v1167_v8  }
  0x46   : > { %267 = vperm.xlu2 %857, %v245_v7  }
  0x4c   : > { %308 = vperm.xlu0 %851, %v244_v9  }
  0x4d   : > { %383 = vperm.xlu1 %856, %v1176_v10  }
  0x4e   : > { %262 = vperm.xlu2 %857, %v244_v9  }
  0x54   : > { %304 = vperm.xlu0 %851, %v243_v11  }
  0x55   : > { %378 = vperm.xlu1 %856, %v1185_v12  }
  0x56   : > { %257 = vperm.xlu2 %857, %v243_v11  }
  0x5c   : > { %300 = vperm.xlu0 %851, %v242_v13  }
  0x5d   : > { %373 = vperm.xlu1 %856, %v1194_v14  }
  0x5e   : > { %252 = vperm.xlu2 %857, %v242_v13  }
  0x64   : > { %858 = vset.pattern.permute.xlu0 %v1013_v0 }
  0x65   : > { %358 = vperm.xlu0 %858, %v1200_v15   ;;  %368 = vperm.xlu1 %856, %v1205_v16  }
  0x66   : > { %363 = vperm.xlu2 %857, %v1210_v17  }
  0x6d   : > { %861 = vset.pattern.permute.xlu0 %v1014_v4  ;;  %859 = vset.pattern.permute.xlu1 %v1014_v4 }
  0x6e   : > { %860 = vset.pattern.permute.xlu2 %v1014_v4  ;;  %449 = vperm.xlu1 %859, %v1158_v6  }
  0x6f   : > { %445 = vperm.xlu2 %860, %v1167_v8   ;;  %433 = vperm.xlu0 %861, %v1194_v14  }
  0x76   : > { %441 = vperm.xlu1 %859, %v1176_v10  }
  0x77   : > { %437 = vperm.xlu2 %860, %v1185_v12  }
  0x7e   : > { %429 = vperm.xlu1 %859, %v1205_v16  }
  0x7f   : > { %425 = vperm.xlu2 %860, %v1210_v17  }
  0x85   : > { %v278_v18 = vpop.permute.xlu2 %277 }
  0x86   : > { %421 = vperm.xlu1 %859, %v1200_v15   ;;  %v296_v43 = vmul.f32 %v290_v27, %v278_v18 }
  0x8f   : > { %v321_v19 = vpop.permute.xlu2 %320 }
  0x90   : > { %v337_v44 = vmul.f32 %v331_v26, %v321_v19 }
  0x92   : > { %v345_v46 = vadd.f32 %v337_v44, %v296_v43 }
  0x98   : > { %v273_v22 = vpop.permute.xlu2 %272 }
  0x99   : > { %v295_v50 = vmul.f32 %v290_v27, %v273_v22 }
  0x9c   : > { %v283_v20 = vpop.permute.xlu1 %282 }
  0x9d   : > { %v288_v21 = vpop.permute.xlu0 %287  ;;  %v297_v36 = vmul.f32 %v290_v27, %v283_v20 }
  0x9e   : > { %v298_v29 = vmul.f32 %v290_v27, %v288_v21 }
  0xa0   : > { %v268_v31 = vpop.permute.xlu2 %267 }
  0xa1   : > { %v294_v59 = vmul.f32 %v290_v27, %v268_v31  ;;  %v413_v31 = vld [vmem:[%s1339_s2 + $0x8] sm:$0xff] }
  0xa6   : > { %v329_v23 = vpop.permute.xlu0 %328  ;;  %v325_v24 = vpop.permute.xlu1 %324 }
  0xa7   : > { %v339_v28 = vmul.f32 %v331_v26, %v329_v23  ;;  %v338_v35 = vmul.f32 %v331_v26, %v325_v24 }
  0xa8   : > { %v263_v41 = vpop.permute.xlu2 %262 }
  0xa9   : > { %v347_v32 = vadd.f32 %v339_v28, %v298_v29  ;;  %v346_v38 = vadd.f32 %v338_v35, %v297_v36  ;;  %v293_v5 = vmul.f32 %v290_v27, %v263_v41  ;;  %v415_v35 = vld [vmem:[%s1339_s2 + $0x18] sm:$0xff]  ;;  %v416_v36 = vld [vmem:[%s1339_s2 + $0x20] sm:$0xff]  ;;  %v1015_v41 = vmov 2  }
  0xaa   : > { %864 = vset.pattern.permute.xlu1 %v1015_v41  ;;  %863 = vset.pattern.permute.xlu0 %v1015_v41 }
  0xab   : > { %556 = vperm.xlu1 %864, %v1176_v10   ;;  %560 = vperm.xlu0 %863, %v1167_v8  }
  0xac   : > { %862 = vset.pattern.permute.xlu2 %v1015_v41 }
  0xad   : > { %564 = vperm.xlu2 %862, %v1158_v6  }
  0xae   : > { %v317_v30 = vpop.permute.xlu0 %316 }
  0xaf   : > { %v394_v33 = vpop.permute.xlu1 %393  ;;  %v336_v51 = vmul.f32 %v331_v26, %v317_v30 }
  0xb0   : > { %v403_v34 = vadd.f32 %v394_v33, %v347_v32  ;;  %v258_v52 = vpop.permute.xlu2 %257  ;;  %v418_v32 = vld [vmem:[%s1339_s2 + $0x30] sm:$0xff] }
  0xb1   : > { %v344_v54 = vadd.f32 %v336_v51, %v295_v50  ;;  %v292_v3 = vmul.f32 %v290_v27, %v258_v52  ;;  %v414_v33 = vld [vmem:[%s1339_s2 + $0x10] sm:$0xff] }
  0xb2   : > { %867 = vtanh.f32 %v403_v34  ;;  %v419_v34 = vld [vmem:[%s1339_s2 + $0x38] sm:$0xff] }
  0xb3   : > { %548 = vperm.xlu1 %864, %v1194_v14   ;;  %540 = vperm.xlu0 %863, %v1210_v17  }
  0xb5   : > { %552 = vperm.xlu2 %862, %v1185_v12  }
  0xb6   : > { %v313_v37 = vpop.permute.xlu0 %312 }
  0xb7   : > { %v389_v39 = vpop.permute.xlu1 %388  ;;  %v335_v58 = vmul.f32 %v331_v26, %v313_v37 }
  0xb8   : > { %v868_v40 = vpop.eup %867  ;;  %v402_v42 = vadd.f32 %v389_v39, %v346_v38  ;;  %v253_v60 = vpop.permute.xlu2 %252 }
  0xb9   : > { %485 = vmatpush.msra.mxu0 %v868_v40  ;;  %784 = vmatpush.msra.mxu3 %v868_v40  ;;  %v343_v62 = vadd.f32 %v335_v58, %v294_v59  ;;  %v291_v11 = vmul.f32 %v290_v27, %v253_v60  ;;  %v417_v27 = vld [vmem:[%s1339_s2 + $0x28] sm:$0xff] }
  0xba   : > { %869 = vtanh.f32 %v402_v42 }
  0xbb   : > { %536 = vperm.xlu1 %864, %v1200_v15  }
  0xbd   : > { %544 = vperm.xlu2 %862, %v1205_v16  }
  0xbe   : > { %v309_v45 = vpop.permute.xlu0 %308 }
  0xbf   : > { %v384_v47 = vpop.permute.xlu1 %383  ;;  %v334_v4 = vmul.f32 %v331_v26, %v309_v45 }
  0xc0   : > { %v870_v48 = vpop.eup %869  ;;  %v401_v49 = vadd.f32 %v384_v47, %v345_v46  ;;  %v364_v13 = vpop.permute.xlu2 %363 }
  0xc1   : > { %486 = vmatpush.msra.mxu0 %v870_v48  ;;  %785 = vmatpush.msra.mxu3 %v870_v48  ;;  %v342_v18 = vadd.f32 %v334_v4, %v293_v5  ;;  %v768_v4 = vld [vmem:[%s1339_s2 + $0x58] sm:$0xff]  ;;  %v769_v5 = vld [vmem:[%s1339_s2 + $0x60] sm:$0xff] }
  0xc2   : > { %871 = vtanh.f32 %v401_v49 }
  0xc6   : > { %v305_v53 = vpop.permute.xlu0 %304 }
  0xc7   : > { %v379_v55 = vpop.permute.xlu1 %378  ;;  %v333_v1 = vmul.f32 %v331_v26, %v305_v53 }
  0xc8   : > { %v872_v56 = vpop.eup %871  ;;  %v400_v57 = vadd.f32 %v379_v55, %v344_v54 }
  0xc9   : > { %487 = vmatpush.msra.mxu0 %v872_v56  ;;  %786 = vmatpush.msra.mxu3 %v872_v56  ;;  %v341_v7 = vadd.f32 %v333_v1, %v292_v3  ;;  %v446_v42 = vpop.permute.xlu2 %445  ;;  %v771_v1 = vld [vmem:[%s1339_s2 + $0x70] sm:$0xff]  ;;  %v772_v3 = vld [vmem:[%s1339_s2 + $0x78] sm:$0xff] }
  0xca   : > { %873 = vtanh.f32 %v400_v57 }
  0xcb   : > { %v397_v22 = vadd.f32 %v364_v13, %v341_v7 }
  0xce   : > { %v301_v61 = vpop.permute.xlu0 %300 }
  0xcf   : > { %v374_v63 = vpop.permute.xlu1 %373  ;;  %v332_v9 = vmul.f32 %v331_v26, %v301_v61  ;;  %v412_v26 = vld [vmem:[%s1339_s2] sm:$0xff] }
  0xd0   : > { %v874_v0 = vpop.eup %873  ;;  %v399_v2 = vadd.f32 %v374_v63, %v343_v62  ;;  %v765_v61 = vld [vmem:[%s1339_s2 + $0x40] sm:$0xff]  ;;  %v770_v62 = vld [vmem:[%s1339_s2 + $0x68] sm:$0xff] }
  0xd1   : > { %488 = vmatpush.msra.mxu0 %v874_v0  ;;  %787 = vmatpush.msra.mxu3 %v874_v0  ;;  %v340_v24 = vadd.f32 %v332_v9, %v291_v11  ;;  %v438_v49 = vpop.permute.xlu2 %437  ;;  %v766_v0 = vld [vmem:[%s1339_s2 + $0x48] sm:$0xff] }
  0xd2   : > { %875 = vtanh.f32 %v399_v2  ;;  %v767_v2 = vld [vmem:[%s1339_s2 + $0x50] sm:$0xff] }
  0xd7   : > { %v369_v19 = vpop.permute.xlu1 %368  ;;  %v359_v20 = vpop.permute.xlu0 %358 }
  0xd8   : > { %v876_v21 = vpop.eup %875  ;;  %v398_v23 = vadd.f32 %v369_v19, %v342_v18  ;;  %v396_v25 = vadd.f32 %v359_v20, %v340_v24 }
  0xd9   : > { %489 = vmatpush.msra.mxu0 %v876_v21  ;;  %788 = vmatpush.msra.mxu3 %v876_v21  ;;  %v426_v54 = vpop.permute.xlu2 %425  ;;  %v641_v21 = vld [vmem:[%s1341_s4] sm:$0x1] }
  0xda   : > { %877 = vtanh.f32 %v398_v23 }
  0xdb   : > { %879 = vtanh.f32 %v397_v22  ;;  %v1016_v22 = vmov 3  }
  0xdc   : > { %881 = vtanh.f32 %v396_v25  ;;  %865 = vset.pattern.permute.xlu2 %v1016_v22  ;;  %866 = vset.pattern.permute.xlu0 %v1016_v22 }
  0xdd   : > { %644 = vperm.xlu2 %865, %v641_v21  }
  0xe0   : > { %v878_v28 = vpop.eup %877  ;;  %v450_v38 = vpop.permute.xlu1 %449 }
  0xe1   : > { %490 = vmatpush.msra.mxu0 %v878_v28  ;;  %789 = vmatpush.msra.mxu3 %v878_v28  ;;  %v880_v29 = vpop.eup %879  ;;  %v434_v8 = vpop.permute.xlu0 %433 }
  0xe2   : > { %v882_v30 = vpop.eup %881 }
  0xe3   : > { %491 = vmatpush.msra.mxu0 %v880_v29  ;;  %790 = vmatpush.msra.mxu3 %v880_v29 }
  0xe5   : > { %492 = vmatpush.msra.mxu0 %v882_v30  ;;  %791 = vmatpush.msra.mxu3 %v882_v30 }
  0xe6   : > { %757 = vmatmul.msk.f32.vlgmr.msra.gmra.mxu0 %vm452_vm0, %v412_v26  ;;  %762 = vmatmul.msk.f32.vlgmr.msra.gmra.mxu3 %vm452_vm0, %v417_v27 }
  0xe8   : > { %v442_v44 = vpop.permute.xlu1 %441 }
  0xee   : > { %758 = vmatmul.msk.f32.gmra.mxu0 %vm452_vm0, %v413_v31  ;;  %763 = vmatmul.msk.f32.gmra.mxu3 %vm452_vm0, %v418_v32 }
  0xf0   : > { %v430_v10 = vpop.permute.xlu1 %429 }
  0xf6   : > { %759 = vmatmul.msk.f32.gmra.mxu0 %vm452_vm0, %v414_v33  ;;  %764 = vmatmul.msk.f32.gmra.mxu3 %vm452_vm0, %v419_v34 }
  0xf8   : > { %v422_v56 = vpop.permute.xlu1 %421 }
  0xfe   : > { %760 = vmatmul.msk.f32.gmra.mxu0 %vm452_vm0, %v415_v35 }
 0x106   : > { %761 = vmatmul.msk.f32.gmra.mxu0 %vm452_vm0, %v416_v36 }
 0x107   : > { %v565_v13 = vpop.permute.xlu2 %564 }
 0x10f   : > { %v553_v24 = vpop.permute.xlu2 %552 }
 0x117   : > { %v545_v32 = vpop.permute.xlu2 %544 }
 0x11d   : > { %v557_v19 = vpop.permute.xlu1 %556  ;;  %v561_v23 = vpop.permute.xlu0 %560 }
 0x125   : > { %v549_v30 = vpop.permute.xlu1 %548 }
 0x163   : > { %v494_v37 = vpop.f32.mrf.mxu0 }
 0x164   : > { %v495_v15 = vadd.f32 %v494_v37, %v422_v56  ;;  %v541_v37 = vpop.permute.xlu0 %540 }
 0x169   : > { %v509_v39 = vpop.f32.mrf.mxu3 }
 0x16a   : > { %v510_v51 = vadd.f32 %v509_v39, %v442_v44 }
 0x16b   : > { %v497_v40 = vpop.f32.mrf.mxu0 }
 0x16c   : > { %v498_v57 = vadd.f32 %v497_v40, %v426_v54  ;;  %v537_v40 = vpop.permute.xlu1 %536 }
 0x171   : > { %v512_v43 = vpop.f32.mrf.mxu3 }
 0x172   : > { %v513_v47 = vadd.f32 %v512_v43, %v446_v42 }
 0x173   : > { %v500_v45 = vpop.f32.mrf.mxu0 }
 0x174   : > { %v501_v55 = vadd.f32 %v500_v45, %v430_v10 }
 0x179   : > { %v515_v46 = vpop.f32.mrf.mxu3 }
 0x17a   : > { %v516_v48 = vadd.f32 %v515_v46, %v450_v38 }
 0x17b   : > { %v503_v50 = vpop.f32.mrf.mxu0 }
 0x17c   : > { %883 = vtanh.f32 %v516_v48  ;;  %v504_v17 = vadd.f32 %v503_v50, %v434_v8 }
 0x17d   : > { %885 = vtanh.f32 %v513_v47  ;;  %v640_v47 = vld [vmem:[%s1340_s3] sm:$0x1] }
 0x17e   : > { %887 = vtanh.f32 %v510_v51 }
 0x182   : > { %v884_v6 = vpop.eup %883 }
 0x183   : > { %v506_v52 = vpop.f32.mrf.mxu0  ;;  %599 = vmatpush.msra.mxu1 %v884_v6  ;;  %792 = vmatpush.msra.mxu2 %v884_v6  ;;  %v886_v14 = vpop.eup %885 }
 0x184   : > { %v507_v53 = vadd.f32 %v506_v52, %v438_v49  ;;  %v888_v12 = vpop.eup %887  ;;  %v645_v49 = vpop.permute.xlu2 %644 }
 0x185   : > { %600 = vmatpush.msra.mxu1 %v886_v14  ;;  %793 = vmatpush.msra.mxu2 %v886_v14 }
 0x186   : > { %889 = vtanh.f32 %v507_v53 }
 0x187   : > { %601 = vmatpush.msra.mxu1 %v888_v12  ;;  %794 = vmatpush.msra.mxu2 %v888_v12  ;;  %891 = vtanh.f32 %v504_v17 }
 0x188   : > { %893 = vtanh.f32 %v501_v55 }
 0x189   : > { %895 = vtanh.f32 %v498_v57 }
 0x18a   : > { %897 = vtanh.f32 %v495_v15 }
 0x18c   : > { %v890_v58 = vpop.eup %889 }
 0x18d   : > { %602 = vmatpush.msra.mxu1 %v890_v58  ;;  %795 = vmatpush.msra.mxu2 %v890_v58  ;;  %v892_v59 = vpop.eup %891 }
 0x18e   : > { %v894_v16 = vpop.eup %893 }
 0x18f   : > { %603 = vmatpush.msra.mxu1 %v892_v59  ;;  %796 = vmatpush.msra.mxu2 %v892_v59  ;;  %v896_v60 = vpop.eup %895 }
 0x190   : > { %v898_v63 = vpop.eup %897 }
 0x191   : > { %604 = vmatpush.msra.mxu1 %v894_v16  ;;  %797 = vmatpush.msra.mxu2 %v894_v16 }
 0x193   : > { %605 = vmatpush.msra.mxu1 %v896_v60  ;;  %798 = vmatpush.msra.mxu2 %v896_v60 }
 0x195   : > { %606 = vmatpush.msra.mxu1 %v898_v63  ;;  %799 = vmatpush.msra.mxu2 %v898_v63 }
 0x196   : > { %773 = vmatmul.msk.f32.vlgmr.msra.gmra.mxu1 %vm452_vm0, %v765_v61  ;;  %778 = vmatmul.msk.f32.vlgmr.msra.gmra.mxu2 %vm452_vm0, %v770_v62 }
 0x19e   : > { %774 = vmatmul.msk.f32.gmra.mxu1 %vm452_vm0, %v766_v0  ;;  %779 = vmatmul.msk.f32.gmra.mxu2 %vm452_vm0, %v771_v1 }
 0x1a6   : > { %775 = vmatmul.msk.f32.gmra.mxu1 %vm452_vm0, %v767_v2  ;;  %780 = vmatmul.msk.f32.gmra.mxu2 %vm452_vm0, %v772_v3 }
 0x1ae   : > { %776 = vmatmul.msk.f32.gmra.mxu1 %vm452_vm0, %v768_v4 }
 0x1b6   : > { %777 = vmatmul.msk.f32.gmra.mxu1 %vm452_vm0, %v769_v5 }
 0x213   : > { %v608_v7 = vpop.f32.mrf.mxu1 }
 0x214   : > { %v609_v42 = vadd.f32 %v608_v7, %v537_v40 }
 0x219   : > { %v623_v9 = vpop.f32.mrf.mxu2 }
 0x21a   : > { %v624_v27 = vadd.f32 %v623_v9, %v557_v19 }
 0x21b   : > { %v611_v11 = vpop.f32.mrf.mxu1 }
 0x21c   : > { %v612_v41 = vadd.f32 %v611_v11, %v541_v37 }
 0x221   : > { %v626_v18 = vpop.f32.mrf.mxu2 }
 0x222   : > { %v627_v28 = vadd.f32 %v626_v18, %v561_v23 }
 0x223   : > { %v614_v20 = vpop.f32.mrf.mxu1 }
 0x224   : > { %v615_v39 = vadd.f32 %v614_v20, %v545_v32 }
 0x229   : > { %v629_v25 = vpop.f32.mrf.mxu2 }
 0x22a   : > { %v630_v29 = vadd.f32 %v629_v25, %v565_v13 }
 0x22b   : > { %v617_v26 = vpop.f32.mrf.mxu1 }
 0x22c   : > { %899 = vtanh.f32 %v630_v29  ;;  %v618_v35 = vadd.f32 %v617_v26, %v549_v30 }
 0x22d   : > { %901 = vtanh.f32 %v627_v28 }
 0x22e   : > { %903 = vtanh.f32 %v624_v27 }
 0x232   : > { %v900_v31 = vpop.eup %899 }
 0x233   : > { %v620_v33 = vpop.f32.mrf.mxu1  ;;  %658 = vmatpush.msrb.mxu2 %v900_v31  ;;  %v902_v34 = vpop.eup %901 }
 0x234   : > { %v621_v36 = vadd.f32 %v620_v33, %v553_v24  ;;  %v904_v38 = vpop.eup %903 }
 0x235   : > { %659 = vmatpush.msrb.mxu2 %v902_v34 }
 0x236   : > { %905 = vtanh.f32 %v621_v36 }
 0x237   : > { %660 = vmatpush.msrb.mxu2 %v904_v38  ;;  %907 = vtanh.f32 %v618_v35 }
 0x238   : > { %909 = vtanh.f32 %v615_v39 }
 0x239   : > { %911 = vtanh.f32 %v612_v41 }
 0x23a   : > { %913 = vtanh.f32 %v609_v42 }
 0x23c   : > { %v906_v43 = vpop.eup %905 }
 0x23d   : > { %661 = vmatpush.msrb.mxu2 %v906_v43  ;;  %v908_v44 = vpop.eup %907 }
 0x23e   : > { %v910_v45 = vpop.eup %909 }
 0x23f   : > { %662 = vmatpush.msrb.mxu2 %v908_v44  ;;  %v912_v46 = vpop.eup %911 }
 0x240   : > { %v914_v48 = vpop.eup %913 }
 0x241   : > { %663 = vmatpush.msrb.mxu2 %v910_v45 }
 0x243   : > { %664 = vmatpush.msrb.mxu2 %v912_v46 }
 0x245   : > { %665 = vmatpush.msrb.mxu2 %v914_v48 }
 0x246   : > { %781 = vmatmul.msk.f32.vlgmr.msrb.gmra.mxu2 %vm452_vm0, %v640_v47 }
 0x2c9   : > { %v667_v50 = vpop.f32.mrf.mxu2 }
 0x2ca   : > { %v668_v51 = vadd.f32 %v667_v50, %v645_v49 }
 0x2cc   : > { %670 = vst [vmem:[%s240_s11] sm:$0x1] %v668_v51 }
 0x2cd   : > { %972 = shalt.err (!%p969_p4)
}
 0x2ce   : > { %802 = dma.vmem_to_hbm [thread:$0]  (%p1097_p11), %s683_s12, 16, %s685_s13, %s672_s15  }
 0x2cf PF: > { %s696_s7 = sand.u32 1, %s999_s18   ;;  %p1348_p7 = scmp.ge.s32.totalorder %s1011_s21, 2 }
 0x2d0   : > { %s697_s26 = scalar_lea.sflag [#allocation4], %s696_s7 }
 0x2d1   : > { %p809_p5 = pnand %p1348_p7, %p1101_p12 }
 0x2d3   : > { %p810_p8 = pneg %p809_p5 }
 0x2d5   : > { %994 = dma.done.wait (%p810_p8), %s697_s26, 16  }
 0x2d6   : > { %996 = vsyncadd (%p810_p8), %s697_s26, 4294967280  ;;  %p18_p10 = scmp.ge.s32.totalorder %s1072_s24, 4   ;;  %s1349_s18 = smov %s1003_s19 }
 0x2d7   : > { %s1350_s19 = smov %s1007_s20  ;;  %s1351_s20 = smov %s1084_s27 }
 0x2d8   : > { %s1352_s21 = smov %s1072_s24  ;;  %20 = sbr.rel (!%p18_p10) target bundleno = 5 (0x5), region = 86 }
 0x2dd   :  { %702 = vsyncpa [#allocation3], 1 }
 0x2de   :  { %704 = vsyncpa [#allocation3 + $0x1], 1 }
 0x2df   :  { %705 = vsyncpa [#allocation4], 1 }
 0x2e0   :  { %707 = vsyncpa [#allocation4 + $0x1], 1 }

</bundles_post_ra>
